<compile_context>
chip_gen: v7x
topology: tpu7x:2x2x1
jax: 0.10.0
libtpu: 0.0.40
codegen_flags: <defaults>
</compile_context>

<pallas_src>
import functools

import jax
import jax.numpy as jnp
from jax.experimental import pallas as pl
from jax.experimental.pallas import tpu as pltpu


IN_F, HID_F, OUT_F = 10, 5, 2


def mlp_kernel(w1t_ref, b1_ref, w2t_ref, b2_ref, xt_ref, ot_ref):
    """Fused MLP tile, lane-dense transposed layout (batch on the lane axis).

    w1t_ref: (5, 10)   resident
    b1_ref : (5, 1)    resident (lane-0 column, broadcast in-kernel once/step)
    w2t_ref: (2, 5)    resident
    b2_ref : (2, 1)    resident
    xt_ref : (10, TM)  x^T tile
    ot_ref : (2, TM)   out^T tile
    """
    xt = xt_ref[...]                                                  # (10, TM)

    # Layer 1 on the MXU: (5,10) @ (10,TM) -> (5,TM), f32 accumulation.
    h = jnp.dot(w1t_ref[...], xt, preferred_element_type=jnp.float32)
    h = jnp.maximum(h + b1_ref[...], 0.0)                             # bias + ReLU (VPU)

    # Layer 2 also on the MXU (it is idle after layer 1): (2,5)@(5,TM) -> (2,TM).
    o = jnp.dot(w2t_ref[...], h, preferred_element_type=jnp.float32)
    ot_ref[...] = (o + b2_ref[...]).astype(ot_ref.dtype)


def _round_up(a, m):
    return ((a + m - 1) // m) * m


@functools.partial(jax.jit, static_argnames=("tm", "input_dtype"))
def mlp_forward(x, w1, b1, w2, b2, *, tm=32768, input_dtype=None):
    """x: (B, 10); w1: (10, 5); b1: (5,); w2: (5, 2); b2: (2,) -> (B, 2)."""
    B = x.shape[0]
    out_dtype = x.dtype

    # Lane-0 / sublane-0 aligned parameter operands (packed once, resident in VMEM).
    w1t = w1.T.astype(jnp.float32)                 # (5, 10)
    w2t = w2.T.astype(jnp.float32)                 # (2, 5)
    b1c = b1.astype(jnp.float32).reshape(HID_F, 1)  # (5, 1)
    b2c = b2.astype(jnp.float32).reshape(OUT_F, 1)  # (2, 1)

    # Pad the batch only to a lane multiple (128); Pallas handles the partial
    # final block via the cdiv grid.
    b_pad = _round_up(B, 128)

    # Tile selection: big enough to amortize the ~0.35 us/step overhead, but keep
    # at least 2 grid steps when the batch allows so v7x's two TensorCores both
    # get work from the "parallel" batch axis.
    tile_m = max(128, min(_round_up(tm, 128), b_pad))
    if b_pad > 128:
        tile_m = min(tile_m, _round_up((b_pad + 1) // 2, 128))
    grid = (pl.cdiv(b_pad, tile_m),)

    # Single fused transpose+pad pass over x (replaces zeros + transpose + set).
    xt = x.T
    if input_dtype is not None:
        # Opt-in reduced-precision input path (halves input HBM bytes).
        xt = xt.astype(input_dtype)
        w1t = w1t.astype(input_dtype)   # native bf16 MXU path; f32 accumulation
    xt = jnp.pad(xt, ((0, 0), (0, b_pad - B)))      # (10, b_pad)

    out_t = pl.pallas_call(
        mlp_kernel,
        out_shape=jax.ShapeDtypeStruct((OUT_F, b_pad), jnp.float32),
        grid=grid,
        in_specs=[
            pl.BlockSpec((HID_F, IN_F), lambda i: (0, 0)),   # w1^T  (resident)
            pl.BlockSpec((HID_F, 1), lambda i: (0, 0)),      # b1    (resident)
            pl.BlockSpec((OUT_F, HID_F), lambda i: (0, 0)),  # w2^T  (resident)
            pl.BlockSpec((OUT_F, 1), lambda i: (0, 0)),      # b2    (resident)
            pl.BlockSpec((IN_F, tile_m), lambda i: (0, i)),  # x^T tile
        ],
        out_specs=pl.BlockSpec((OUT_F, tile_m), lambda i: (0, i)),
        compiler_params=pltpu.CompilerParams(
            dimension_semantics=("parallel",),               # v7x: 2 TCs
        ),
    )(w1t, b1c, w2t, b2c, xt)

    return out_t[:, :B].T.astype(out_dtype)                  # back to (B, 2)


def init_params(key):
    # Deterministic init mimicking nn.Linear's uniform(-1/sqrt(fan_in), ...)
    k1, k2, k3, k4 = jax.random.split(key, 4)
    bound1 = 1.0 / jnp.sqrt(10.0)
    bound2 = 1.0 / jnp.sqrt(5.0)
    w1 = jax.random.uniform(k1, (IN_F, HID_F), jnp.float32, -bound1, bound1)
    b1 = jax.random.uniform(k2, (HID_F,), jnp.float32, -bound1, bound1)
    w2 = jax.random.uniform(k3, (HID_F, OUT_F), jnp.float32, -bound2, bound2)
    b2 = jax.random.uniform(k4, (OUT_F,), jnp.float32, -bound2, bound2)
    return w1, b1, w2, b2


if __name__ == "__main__":
    key = jax.random.PRNGKey(0)
    k_x, k_p = jax.random.split(key)

    w1, b1, w2, b2 = init_params(k_p)

    def ref_fn(xx):
        return jnp.maximum(xx @ w1 + b1, 0.0) @ w2 + b2

    # Small batch (single grid step, partial-free path).
    B = 8
    x = jax.random.normal(k_x, (B, IN_F), jnp.float32)
    out = jax.block_until_ready(mlp_forward(x, w1, b1, w2, b2))
    assert out.shape == (B, OUT_F)
    assert jnp.allclose(out, ref_fn(x), atol=1e-5, rtol=1e-5), "mismatch (B=8)"

    # Batch exercising the cdiv grid, 128-padding, and the >=2-step (v7x) cap:
    # B=200 -> b_pad=256 -> tile_m=128 -> grid=(2,).
    B2 = 200
    x2 = jax.random.normal(k_x, (B2, IN_F), jnp.float32)
    out2 = jax.block_until_ready(mlp_forward(x2, w1, b1, w2, b2, tm=128))
    assert out2.shape == (B2, OUT_F)
    assert jnp.allclose(out2, ref_fn(x2), atol=1e-5, rtol=1e-5), "mismatch (B=200)"

    # Opt-in bf16 input path (looser tolerance; intentionally diverges from f32).
    out3 = jax.block_until_ready(
        mlp_forward(x2, w1, b1, w2, b2, input_dtype=jnp.bfloat16))
    assert out3.shape == (B2, OUT_F)
    assert jnp.allclose(out3, ref_fn(x2), atol=5e-2, rtol=5e-2), "mismatch (bf16)"

    print("KERNEL_OK")
</pallas_src>

<mosaic_0001>
module attributes {stable_mosaic.version = 11 : i64} {
  func.func @mlp_kernel(%arg0: i32, %arg1: memref<5x10xf32, #tpu.memory_space<vmem>>, %arg2: memref<5x1xf32, #tpu.memory_space<vmem>>, %arg3: memref<2x5xf32, #tpu.memory_space<vmem>>, %arg4: memref<2x1xf32, #tpu.memory_space<vmem>>, %arg5: memref<10x128xf32, #tpu.memory_space<vmem>>, %arg6: memref<2x128xf32, #tpu.memory_space<vmem>>) attributes {dimension_semantics = [#tpu.dimension_semantics<parallel>], iteration_bounds = array<i64: 1>, scalar_prefetch = 0 : i64, scratch_operands = 0 : i64, tpu.core_type = #tpu.core_type<tc>, window_params = [{pipeline_mode = #tpu.pipeline_mode<synchronous>, transform_indices = @transform_0, window_bounds = array<i64: 5, 10>}, {pipeline_mode = #tpu.pipeline_mode<synchronous>, transform_indices = @transform_1, window_bounds = array<i64: 5, 1>}, {pipeline_mode = #tpu.pipeline_mode<synchronous>, transform_indices = @transform_2, window_bounds = array<i64: 2, 5>}, {pipeline_mode = #tpu.pipeline_mode<synchronous>, transform_indices = @transform_3, window_bounds = array<i64: 2, 1>}, {transform_indices = @transform_4, window_bounds = array<i64: 10, 128>}, {transform_indices = @transform_5, window_bounds = array<i64: 2, 128>}]} {
    %c0 = arith.constant 0 : index
    %c0_0 = arith.constant 0 : index
    %0 = vector.load %arg5[%c0, %c0_0] : memref<10x128xf32, #tpu.memory_space<vmem>>, vector<10x128xf32>
    %c0_1 = arith.constant 0 : index
    %c0_2 = arith.constant 0 : index
    %1 = vector.load %arg1[%c0_1, %c0_2] : memref<5x10xf32, #tpu.memory_space<vmem>>, vector<5x10xf32>
    %cst = arith.constant dense<0.000000e+00> : vector<5x128xf32>
    %2 = tpu.matmul %1, %0, %cst {dimension_numbers = #tpu.dot_dimension_numbers<[1], [0], [0], [1], [0, 0, 1, 1], [], []>} : vector<5x10xf32>, vector<10x128xf32>, vector<5x128xf32> -> vector<5x128xf32>
    %c0_3 = arith.constant 0 : index
    %c0_4 = arith.constant 0 : index
    %3 = vector.load %arg2[%c0_3, %c0_4] : memref<5x1xf32, #tpu.memory_space<vmem>>, vector<5x1xf32>
    %4 = vector.broadcast %3 : vector<5x1xf32> to vector<5x128xf32>
    %5 = arith.addf %2, %4 : vector<5x128xf32>
    %cst_5 = arith.constant 0.000000e+00 : f32
    %6 = vector.broadcast %cst_5 : f32 to vector<5x128xf32>
    %7 = arith.maximumf %5, %6 : vector<5x128xf32>
    %c0_6 = arith.constant 0 : index
    %c0_7 = arith.constant 0 : index
    %8 = vector.load %arg3[%c0_6, %c0_7] : memref<2x5xf32, #tpu.memory_space<vmem>>, vector<2x5xf32>
    %cst_8 = arith.constant dense<0.000000e+00> : vector<2x128xf32>
    %9 = tpu.matmul %8, %7, %cst_8 {dimension_numbers = #tpu.dot_dimension_numbers<[1], [0], [0], [1], [0, 0, 1, 1], [], []>} : vector<2x5xf32>, vector<5x128xf32>, vector<2x128xf32> -> vector<2x128xf32>
    %c0_9 = arith.constant 0 : index
    %c0_10 = arith.constant 0 : index
    %10 = vector.load %arg4[%c0_9, %c0_10] : memref<2x1xf32, #tpu.memory_space<vmem>>, vector<2x1xf32>
    %11 = vector.broadcast %10 : vector<2x1xf32> to vector<2x128xf32>
    %12 = arith.addf %9, %11 : vector<2x128xf32>
    %c0_11 = arith.constant 0 : index
    %c0_12 = arith.constant 0 : index
    %13 = vector.load %arg6[%c0_11, %c0_12] : memref<2x128xf32, #tpu.memory_space<vmem>>, vector<2x128xf32>
    tpu.vector_store %arg6[%c0_11, %c0_12], %12 {strides = array<i32>} : memref<2x128xf32, #tpu.memory_space<vmem>>, vector<2x128xf32>,
    return
  }
  func.func @transform_0(%arg0: i32) -> (i32, i32) {
    %c0_i32 = arith.constant 0 : i32
    %c0_i32_0 = arith.constant 0 : i32
    %c0_i32_1 = arith.constant 0 : i32
    return %c0_i32, %c0_i32_0 : i32, i32
  }
  func.func @transform_1(%arg0: i32) -> (i32, i32) {
    %c0_i32 = arith.constant 0 : i32
    %c0_i32_0 = arith.constant 0 : i32
    %c0_i32_1 = arith.constant 0 : i32
    return %c0_i32, %c0_i32_0 : i32, i32
  }
  func.func @transform_2(%arg0: i32) -> (i32, i32) {
    %c0_i32 = arith.constant 0 : i32
    %c0_i32_0 = arith.constant 0 : i32
    %c0_i32_1 = arith.constant 0 : i32
    return %c0_i32, %c0_i32_0 : i32, i32
  }
  func.func @transform_3(%arg0: i32) -> (i32, i32) {
    %c0_i32 = arith.constant 0 : i32
    %c0_i32_0 = arith.constant 0 : i32
    %c0_i32_1 = arith.constant 0 : i32
    return %c0_i32, %c0_i32_0 : i32, i32
  }
  func.func @transform_4(%arg0: i32) -> (i32, i32) {
    %c0_i32 = arith.constant 0 : i32
    %c0_i32_0 = arith.constant 0 : i32
    return %c0_i32, %arg0 : i32, i32
  }
  func.func @transform_5(%arg0: i32) -> (i32, i32) {
    %c0_i32 = arith.constant 0 : i32
    %c0_i32_0 = arith.constant 0 : i32
    return %c0_i32, %arg0 : i32, i32
  }
}

</mosaic_0001>

<bundles_post_ra>
// kernel: mlp_forward.1
= control target key start
LH: loop header
LB: loop body
LE: loop exit
PB: predicated region body
PF: predicated region fallthrough
CT: control target
= control target key end

     0   :  { %vm33_vm0 = vcmask 1041408   ;;  %v229_v0 = vmov 0.0|0.0   ;;  %vm230_vm1 = vmmov 1   ;;  %vm231_vm3 = vmmov 0   ;;  %s285_s4 = inlined_call_operand.vmem [shape: f32[10,128], index: 4, kind: input, shape index: {}]   ;;  %s286_s1 = inlined_call_operand.vmem [shape: f32[5,1], index: 1, kind: input, shape index: {}]   ;;  %s287_s0 = inlined_call_operand.vmem [shape: f32[5,10], index: 0, kind: input, shape index: {}]   ;;  %s288_s3 = inlined_call_operand.vmem [shape: f32[2,1], index: 3, kind: input, shape index: {}]   ;;  %s289_s2 = inlined_call_operand.vmem [shape: f32[2,5], index: 2, kind: input, shape index: {}]   ;;  %s290_s5 = inlined_call_operand.vmem [shape: f32[2,128], index: 5, kind: output, shape index: {}]  }
   0x1   :  { %219 = vmatprep.subr.bf16.mxu0 %v229_v0  ;;  %v20_v1 = vld [vmem:[%s285_s4] sm:$0xff]  ;;  %v21_v2 = vld [vmem:[%s285_s4 + $0x8] sm:$0x3]  ;;  %vm221_vm2 = vmpackc.low %vm33_vm0, %vm230_vm1  ;;  %v232_v4 = vmov 0.0   ;;  %v233_v5 = vmov 0   ;;  %vm29_vm4 = vcmask 80896  }
   0x2   :  { %v220_v3 = vpack.c.bf16 %v21_v2, %v20_v1  ;;  %211 = vmatprep.mubr.msk.f32.mxu0 %vm231_vm3, %v232_v4  ;;  %228 = vset.pattern.permute.xlu0 %v233_v5  ;;  %v23_v6 = vld [vmem:[%s286_s1] sm:$0x1f]  ;;  %vm119_vm5 = vcmask 1044480   ;;  %vm115_vm6 = vcmask 39936  }
   0x3   :  { %26 = vperm.xlu0 %228, %v23_v6   ;;  %214 = vmatprep.subr.mxu1 %v232_v4  ;;  %v22_v7 = vld [vmem:[%s287_s0] sm:$0x1f] }
   0x4   :  { %222 = vmatpush3.bf16.msk.msra.mxu0 %vm221_vm2, %v220_v3  ;;  %v109_v8 = vld [vmem:[%s288_s3] sm:$0x3]  ;;  %216 = vmatprep.mubr.msk.f32.mxu1 %vm231_vm3, %v232_v4 }
   0x5   :  { %v108_v14 = vld [vmem:[%s289_s2] sm:$0x3] }
   0x7   :  { %212 = vmatmul.mubr.msk.f32.vlgmr.msra.gmra.mrb[0].mxu0 %vm29_vm4, %v22_v7  ;;  %112 = vperm.xlu0 %228, %v109_v8  }
  0x82   :  { %v27_v9 = vpop.permute.xlu0 %26 }
  0x86   :  { %v113_v15 = vpop.permute.xlu0 %112 }
  0xda   :  { %v103_v10 = vpop.f32.mrb[0].mxu0 }
  0xdb   :  { %v104_v11 = vadd.f32 %v103_v10, %v27_v9  ;;  %v213_v12 = vpop.f32.mrb[1].mxu0 }
  0xdd   :  { %v107_v13 = vmax.f32 %v104_v11, 0.0 }
  0xdf   :  { %215 = vmatpush3.msk.msra.mxu1 %vm119_vm5, %v107_v13 }
  0xe0   :  { %217 = vmatmul.mubr.msk.f32.vlgmr.msra.gmra.mrb[0].mxu1 %vm115_vm6, %v108_v14 }
 0x1b3   :  { %v189_v16 = vpop.f32.mrb[0].mxu1 }
 0x1b4   :  { %v190_v17 = vadd.f32 %v189_v16, %v113_v15  ;;  %v218_v18 = vpop.f32.mrb[1].mxu1 }
 0x1b6   :  { %193 = vst [vmem:[%s290_s5] sm:$0x3] %v190_v17 }

</bundles_post_ra>
